<compile_context>
chip_gen: v6e
topology: v6e:2x2x1
jax: 0.10.0
libtpu: 0.0.40
codegen_flags: <defaults>
</compile_context>

<pallas_src>
import jax
import jax.numpy as jnp
from jax.experimental import pallas as pl
from jax.experimental.pallas import tpu as pltpu


def _round_up(x, m):
    return (x + m - 1) // m * m


def _round_down(x, m):
    return max(m, x // m * m)


def _vmem_capacity_bytes():
    # Query physical VMEM (v5e/v6e: 128 MiB, v7x: 64 MiB per TensorCore);
    # fall back to the smallest so the tiling is always safe.
    try:
        info = pltpu.get_tpu_info()
        cap = getattr(info, "vmem_capacity_bytes", None)
        if cap:
            return int(cap)
    except Exception:
        pass
    return 64 * 1024 * 1024


def ffn_kernel(x_ref, w1_ref, b1_ref, w2_ref, b2_ref, o_ref, acc_ref):
    # Grid axes: i = row tile (parallel), e = output-E tile (parallel),
    #            j = hidden tile (reduction, innermost).
    # x_ref:  (tm, E)    w1_ref: (E, th)   b1_ref: (1, th)  [f32]
    # w2_ref: (th, te)   b2_ref: (1, te)   acc_ref: (tm, te) f32 scratch
    j = pl.program_id(2)

    @pl.when(j == 0)
    def _():
        # Fold the b2 add into the accumulator init (saves a (tm, te) VPU
        # pass and a per-step broadcast).
        acc_ref[...] = jnp.broadcast_to(
            b2_ref[...].astype(jnp.float32), acc_ref.shape)

    # First matmul on this hidden slab (bf16 operands -> f32), then bias+ReLU.
    # Per-tile ReLU is exact: it commutes with the W1-column / W2-row split.
    h = jnp.dot(x_ref[...], w1_ref[...], preferred_element_type=jnp.float32)
    h = jnp.maximum(h + b1_ref[...], 0.0)

    # Second matmul: accumulate this hidden slab's contribution in f32.
    acc_ref[...] += jnp.dot(h.astype(w2_ref.dtype), w2_ref[...],
                            preferred_element_type=jnp.float32)

    @pl.when(j == pl.num_programs(2) - 1)
    def _():
        o_ref[...] = acc_ref[...].astype(o_ref.dtype)   # dropout == identity


def ffn_forward(x, w1, b1, w2, b2, *, tm=None, th=None,
                compute_dtype=jnp.bfloat16):
    """x: (B, T, E). w1: (E, H), b1: (1, H), w2: (H, E), b2: (1, E)."""
    B, T, E = x.shape
    E_in, H = w1.shape
    assert E_in == E and w2.shape == (H, E)
    M = B * T

    cdt = jnp.dtype(compute_dtype if compute_dtype is not None else x.dtype)
    cb = cdt.itemsize                       # compute-dtype bytes
    ob = jnp.dtype(x.dtype).itemsize        # output-dtype bytes

    # Lane-dense padding: last dims -> multiples of 128, rows -> multiple of 8.
    Ep = _round_up(E, 128)
    Hp = _round_up(H, 128)
    Mp = _round_up(M, 8)

    vmem_cap = _vmem_capacity_bytes()
    # Leave headroom for Mosaic internal scratch: ~56 MiB of 64 on v7x,
    # ~112 MiB of 128 on v5e/v6e.
    budget = (vmem_cap * 7) // 8

    # Row-tile default scales with VMEM (tm sets arithmetic intensity: weight
    # HBM traffic ~ 1/tm).  Hidden slab default 512.
    if tm is None:
        tm = 1024 if vmem_cap >= 96 * 1024 * 1024 else 512
    if th is None:
        th = 512

    tm_eff = min(tm, Mp)
    tm_eff = _round_down(tm_eff, 128) if tm_eff >= 128 else _round_up(tm_eff, 8)
    th_eff = _round_down(min(th, Hp), 128)

    # Output-E tiling: normally one tile.  For tiny-M / decode shapes where
    # grid_m == 1, split E so both TensorCores get a parallel block (also
    # shrinks per-core acc/out/W2 footprint).  Splitting E is reduction-free.
    grid_m_prelim = -(-Mp // tm_eff)
    if grid_m_prelim >= 2 or Ep < 256:
        te_eff = Ep
    elif Ep % 256 == 0:
        te_eff = Ep // 2
    else:
        te_eff = 128

    def footprint(tm_, th_, te_):
        return (2 * (tm_ * Ep * cb          # x tile (double-buffered)
                     + Ep * th_ * cb        # W1 slab
                     + th_ * 4              # b1 slab (f32)
                     + th_ * te_ * cb       # W2 slab
                     + te_ * 4              # b2 (f32)
                     + tm_ * te_ * ob)      # output tile
                + tm_ * te_ * 4             # f32 accumulator scratch
                + tm_ * th_ * (4 + cb))     # h intermediate (f32) + cdt copy

    # Fit the budget: shrink th first (slab size only; total weight HBM
    # traffic is unchanged), then tm (which costs arithmetic intensity).
    while footprint(tm_eff, th_eff, te_eff) > budget and th_eff > 256:
        th_eff = _round_down(th_eff // 2, 128)
    while footprint(tm_eff, th_eff, te_eff) > budget and tm_eff > 256:
        tm_eff = _round_down(tm_eff // 2, 128)
    while footprint(tm_eff, th_eff, te_eff) > budget and th_eff > 128:
        th_eff = _round_down(th_eff // 2, 128)
    while footprint(tm_eff, th_eff, te_eff) > budget and tm_eff > 8:
        tm_eff = _round_down(tm_eff // 2, 8)

    # Pad the problem up to tile multiples (exact: padded hidden cols have
    # zero W1 cols + zero b1 -> ReLU(0)=0 and zero W2 rows; padded M/E rows
    # and cols are sliced off below).
    Mp = _round_up(Mp, tm_eff)
    Hp = _round_up(Hp, th_eff)
    grid_m = Mp // tm_eff
    grid_e = Ep // te_eff
    grid_h = Hp // th_eff

    x2d = jnp.pad(x.reshape(M, E), ((0, Mp - M), (0, Ep - E))).astype(cdt)
    w1p = jnp.pad(w1, ((0, Ep - E), (0, Hp - H))).astype(cdt)
    w2p = jnp.pad(w2, ((0, Hp - H), (0, Ep - E))).astype(cdt)
    b1p = jnp.pad(b1.reshape(1, H), ((0, 0), (0, Hp - H))).astype(jnp.float32)
    b2p = jnp.pad(b2.reshape(1, E), ((0, 0), (0, Ep - E))).astype(jnp.float32)

    cost = pl.CostEstimate(
        flops=2 * Mp * Ep * Hp * (grid_e + 1),           # matmul1 (per e) + matmul2
        transcendentals=0,
        bytes_accessed=(cb * Mp * Ep                     # x read once per row tile
                        + cb * grid_m * (grid_e + 1) * Ep * Hp  # streamed W1 + W2
                        + ob * Mp * Ep                   # output written once
                        + 4 * (Hp + Ep)),                # biases
    )

    out2d = pl.pallas_call(
        ffn_kernel,
        out_shape=jax.ShapeDtypeStruct((Mp, Ep), x.dtype),
        grid_spec=pltpu.PrefetchScalarGridSpec(
            num_scalar_prefetch=0,
            grid=(grid_m, grid_e, grid_h),
            in_specs=[
                pl.BlockSpec((tm_eff, Ep), lambda i, e, j: (i, 0)),      # x rows
                pl.BlockSpec((Ep, th_eff), lambda i, e, j: (0, j)),      # W1 slab
                pl.BlockSpec((1, th_eff), lambda i, e, j: (0, j)),       # b1 slab
                pl.BlockSpec((th_eff, te_eff), lambda i, e, j: (j, e)),  # W2 slab
                pl.BlockSpec((1, te_eff), lambda i, e, j: (0, e)),       # b2
            ],
            out_specs=pl.BlockSpec((tm_eff, te_eff), lambda i, e, j: (i, e)),
            scratch_shapes=[pltpu.VMEM((tm_eff, te_eff), jnp.float32)],
        ),
        compiler_params=pltpu.CompilerParams(
            dimension_semantics=("parallel", "parallel", "arbitrary"),
            vmem_limit_bytes=int(budget)),
        cost_estimate=cost,
    )(x2d, w1p, b1p, w2p, b2p)

    return out2d[:M, :E].reshape(B, T, E)


def ffn_reference(x, w1, b1, w2, b2):
    h = jnp.maximum(x @ w1 + b1[0], 0.0)
    return h @ w2 + b2[0]


def ffn_reference_matched(x, w1, b1, w2, b2, compute_dtype=jnp.bfloat16):
    # Same precision policy as the kernel: bf16 operands, f32 accumulation,
    # f32 bias adds, h recast to bf16 before the second matmul.
    h = jnp.dot(x.astype(compute_dtype), w1.astype(compute_dtype),
                preferred_element_type=jnp.float32) + b1[0].astype(jnp.float32)
    h = jnp.maximum(h, 0.0)
    y = jnp.dot(h.astype(compute_dtype), w2.astype(compute_dtype),
                preferred_element_type=jnp.float32) + b2[0].astype(jnp.float32)
    return y.astype(x.dtype)


if __name__ == "__main__":
    # Small GPT-ish shapes: batch=2, seq=8, embed=32, hidden=4*embed=128.
    B, T, E = 2, 8, 32
    H = 4 * E

    key = jax.random.PRNGKey(0)
    kx, kw1, kb1, kw2, kb2 = jax.random.split(key, 5)

    x = jax.random.normal(kx, (B, T, E), dtype=jnp.float32)
    # Deterministic "init": scaled normals (shapes match nn.Linear params,
    # stored transposed as (in, out)).
    w1 = jax.random.normal(kw1, (E, H), dtype=jnp.float32) * (1.0 / E ** 0.5)
    b1 = jax.random.normal(kb1, (1, H), dtype=jnp.float32) * 0.01
    w2 = jax.random.normal(kw2, (H, E), dtype=jnp.float32) * (1.0 / H ** 0.5)
    b2 = jax.random.normal(kb2, (1, E), dtype=jnp.float32) * 0.01

    out = ffn_forward(x, w1, b1, w2, b2)   # bf16 compute, f32 accumulate
    out = jax.block_until_ready(out)
    assert out.shape == (B, T, E)

    # Tight check vs a reference using the kernel's exact precision policy.
    ref_matched = ffn_reference_matched(x, w1, b1, w2, b2)
    assert jnp.allclose(out, ref_matched, atol=1e-3, rtol=1e-3), \
        "mismatch vs bf16-matched reference"

    # Loose check vs the full f32 reference (bf16 operand rounding only).
    ref_f32 = ffn_reference(x, w1, b1, w2, b2)
    assert jnp.allclose(out, ref_f32, atol=5e-2, rtol=5e-2), \
        "mismatch vs f32 reference"

    print("KERNEL_OK")
</pallas_src>

<mosaic_0001>
module attributes {stable_mosaic.version = 11 : i64} {
  func.func @ffn_kernel(%arg0: i32, %arg1: i32, %arg2: i32, %arg3: memref<16x128xbf16, #tpu.memory_space<vmem>>, %arg4: memref<128x128xbf16, #tpu.memory_space<vmem>>, %arg5: memref<1x128xf32, #tpu.memory_space<vmem>>, %arg6: memref<128x128xbf16, #tpu.memory_space<vmem>>, %arg7: memref<1x128xf32, #tpu.memory_space<vmem>>, %arg8: memref<16x128xf32, #tpu.memory_space<vmem>>, %arg9: memref<16x128xf32, #tpu.memory_space<vmem>>) attributes {dimension_semantics = [#tpu.dimension_semantics<parallel>, #tpu.dimension_semantics<parallel>, #tpu.dimension_semantics<arbitrary>], iteration_bounds = array<i64: 1, 1, 1>, scalar_prefetch = 0 : i64, scratch_operands = 1 : i64, tpu.core_type = #tpu.core_type<tc>, window_params = [{transform_indices = @transform_0, window_bounds = array<i64: 16, 128>}, {transform_indices = @transform_1, window_bounds = array<i64: 128, 128>}, {transform_indices = @transform_2, window_bounds = array<i64: 1, 128>}, {transform_indices = @transform_3, window_bounds = array<i64: 128, 128>}, {transform_indices = @transform_4, window_bounds = array<i64: 1, 128>}, {transform_indices = @transform_5, window_bounds = array<i64: 16, 128>}]} {
    %c0_i32 = arith.constant 0 : i32
    %0 = arith.cmpi eq, %arg2, %c0_i32 : i32
    %1 = arith.extui %0 : i1 to i32
    %c0_i32_0 = arith.constant 0 : i32
    %2 = arith.cmpi ne, %1, %c0_i32_0 : i32
    scf.if %2 {
      %c0_16 = arith.constant 0 : index
      %c0_17 = arith.constant 0 : index
      %20 = vector.load %arg7[%c0_16, %c0_17] : memref<1x128xf32, #tpu.memory_space<vmem>>, vector<1x128xf32>
      %21 = vector.shape_cast %20 : vector<1x128xf32> to vector<1x128xf32>
      %22 = vector.broadcast %21 : vector<1x128xf32> to vector<16x128xf32>
      %c0_18 = arith.constant 0 : index
      %c0_19 = arith.constant 0 : index
      %23 = vector.load %arg9[%c0_18, %c0_19] : memref<16x128xf32, #tpu.memory_space<vmem>>, vector<16x128xf32>
      tpu.vector_store %arg9[%c0_18, %c0_19], %22 {strides = array<i32>} : memref<16x128xf32, #tpu.memory_space<vmem>>, vector<16x128xf32>,
    } else {
    }
    %c0 = arith.constant 0 : index
    %c0_1 = arith.constant 0 : index
    %3 = vector.load %arg3[%c0, %c0_1] : memref<16x128xbf16, #tpu.memory_space<vmem>>, vector<16x128xbf16>
    %c0_2 = arith.constant 0 : index
    %c0_3 = arith.constant 0 : index
    %4 = vector.load %arg4[%c0_2, %c0_3] : memref<128x128xbf16, #tpu.memory_space<vmem>>, vector<128x128xbf16>
    %cst = arith.constant dense<0.000000e+00> : vector<16x128xf32>
    %5 = tpu.matmul %3, %4, %cst {dimension_numbers = #tpu.dot_dimension_numbers<[1], [0], [0], [1], [0, 0, 1, 1], [], []>} : vector<16x128xbf16>, vector<128x128xbf16>, vector<16x128xf32> -> vector<16x128xf32>
    %c0_4 = arith.constant 0 : index
    %c0_5 = arith.constant 0 : index
    %6 = vector.load %arg5[%c0_4, %c0_5] : memref<1x128xf32, #tpu.memory_space<vmem>>, vector<1x128xf32>
    %7 = vector.broadcast %6 : vector<1x128xf32> to vector<16x128xf32>
    %8 = arith.addf %5, %7 : vector<16x128xf32>
    %cst_6 = arith.constant 0.000000e+00 : f32
    %9 = vector.broadcast %cst_6 : f32 to vector<16x128xf32>
    %10 = arith.maximumf %8, %9 : vector<16x128xf32>
    %c0_7 = arith.constant 0 : index
    %c0_8 = arith.constant 0 : index
    %11 = vector.load %arg9[%c0_7, %c0_8] : memref<16x128xf32, #tpu.memory_space<vmem>>, vector<16x128xf32>
    %12 = arith.truncf %10 : vector<16x128xf32> to vector<16x128xbf16>
    %c0_9 = arith.constant 0 : index
    %c0_10 = arith.constant 0 : index
    %13 = vector.load %arg6[%c0_9, %c0_10] : memref<128x128xbf16, #tpu.memory_space<vmem>>, vector<128x128xbf16>
    %cst_11 = arith.constant dense<0.000000e+00> : vector<16x128xf32>
    %14 = tpu.matmul %12, %13, %cst_11 {dimension_numbers = #tpu.dot_dimension_numbers<[1], [0], [0], [1], [0, 0, 1, 1], [], []>} : vector<16x128xbf16>, vector<128x128xbf16>, vector<16x128xf32> -> vector<16x128xf32>
    %15 = arith.addf %11, %14 : vector<16x128xf32>
    %c0_12 = arith.constant 0 : index
    %c0_13 = arith.constant 0 : index
    %16 = vector.load %arg9[%c0_12, %c0_13] : memref<16x128xf32, #tpu.memory_space<vmem>>, vector<16x128xf32>
    tpu.vector_store %arg9[%c0_12, %c0_13], %15 {strides = array<i32>} : memref<16x128xf32, #tpu.memory_space<vmem>>, vector<16x128xf32>,
    %c0_i32_14 = arith.constant 0 : i32
    %17 = arith.cmpi eq, %arg2, %c0_i32_14 : i32
    %18 = arith.extui %17 : i1 to i32
    %c0_i32_15 = arith.constant 0 : i32
    %19 = arith.cmpi ne, %18, %c0_i32_15 : i32
    scf.if %19 {
      %c0_16 = arith.constant 0 : index
      %c0_17 = arith.constant 0 : index
      %20 = vector.load %arg9[%c0_16, %c0_17] : memref<16x128xf32, #tpu.memory_space<vmem>>, vector<16x128xf32>
      %c0_18 = arith.constant 0 : index
      %c0_19 = arith.constant 0 : index
      %21 = vector.load %arg8[%c0_18, %c0_19] : memref<16x128xf32, #tpu.memory_space<vmem>>, vector<16x128xf32>
      tpu.vector_store %arg8[%c0_18, %c0_19], %20 {strides = array<i32>} : memref<16x128xf32, #tpu.memory_space<vmem>>, vector<16x128xf32>,
    } else {
    }
    return
  }
  func.func @transform_0(%arg0: i32, %arg1: i32, %arg2: i32) -> (i32, i32) {
    %c0_i32 = arith.constant 0 : i32
    %c0_i32_0 = arith.constant 0 : i32
    return %arg0, %c0_i32 : i32, i32
  }
  func.func @transform_1(%arg0: i32, %arg1: i32, %arg2: i32) -> (i32, i32) {
    %c0_i32 = arith.constant 0 : i32
    %c0_i32_0 = arith.constant 0 : i32
    return %c0_i32, %arg2 : i32, i32
  }
  func.func @transform_2(%arg0: i32, %arg1: i32, %arg2: i32) -> (i32, i32) {
    %c0_i32 = arith.constant 0 : i32
    %c0_i32_0 = arith.constant 0 : i32
    return %c0_i32, %arg2 : i32, i32
  }
  func.func @transform_3(%arg0: i32, %arg1: i32, %arg2: i32) -> (i32, i32) {
    %c0_i32 = arith.constant 0 : i32
    return %arg2, %arg1 : i32, i32
  }
  func.func @transform_4(%arg0: i32, %arg1: i32, %arg2: i32) -> (i32, i32) {
    %c0_i32 = arith.constant 0 : i32
    %c0_i32_0 = arith.constant 0 : i32
    return %c0_i32, %arg1 : i32, i32
  }
  func.func @transform_5(%arg0: i32, %arg1: i32, %arg2: i32) -> (i32, i32) {
    %c0_i32 = arith.constant 0 : i32
    return %arg0, %arg1 : i32, i32
  }
}

</mosaic_0001>

<bundles_post_ra>
// kernel: tpu_custom_call.1
= control target key start
LH: loop header
LB: loop body
LE: loop exit
PB: predicated region body
PF: predicated region fallthrough
CT: control target
= control target key end

     0   :  { %10 = vsyncpa [#allocation4], 0  ;;  %s583_s0 = inlined_call_operand.hbm [shape: bf16[16,128], index: 0, kind: input, shape index: {}]   ;;  %s584_s1 = inlined_call_operand.hbm [shape: bf16[128,128], index: 1, kind: input, shape index: {}]   ;;  %s585_s2 = inlined_call_operand.vmem [shape: f32[1,128], index: 2, kind: input, shape index: {}]   ;;  %s586_s3 = inlined_call_operand.hbm [shape: bf16[128,128], index: 3, kind: input, shape index: {}]   ;;  %s587_s4 = inlined_call_operand.vmem [shape: f32[1,128], index: 4, kind: input, shape index: {}]   ;;  %s588_s5 = inlined_call_operand.hbm [shape: f32[16,128], index: 5, kind: output, shape index: {}]  }
   0x1   :  { %11 = vsyncpa [#allocation7], 0 }
   0x2   :  { %12 = vsyncpa [#allocation5], 0  ;;  %s525_s18 = smov [#allocation6]   ;;  %s526_s20 = smov [#allocation3]  }
   0x3   :  { %s30_s19 = sshll.u32 %s525_s18, 4  ;;  %s18_s21 = sshll.u32 %s526_s20, 4  ;;  %s31_s19 = int_to_ptr.vmem [resolvable:$true] %s30_s19  ;;  %s19_s21 = int_to_ptr.vmem [resolvable:$true] %s18_s21 }
   0x4   :  { %s447_s22 = scalar_lea.vmem %s31_s19, 1024  ;;  %p452_p1 = scmp.lt.s32.totalorder %s31_s19, %s31_s19 }
   0x5   :  { %p448_p0 = scmp.ne.s32.totalorder %s31_s19, %s447_s22  ;;  %p453_p2 = scmp.lt.s32.totalorder %s447_s22, %s447_s22 }
   0x7   :  { %p454_p3 = por %p453_p2, %p452_p1 }
   0x9   :  { %p455_p4 = pnand %p454_p3, %p448_p0 }
   0xb   :  { %458 = shalt.err (!%p455_p4)
}
   0xc   :  { %s527_s23 = smov 64   ;;  %s528_s24 = smov 4  }
   0xd   :  { %36 = dma.hbm_to_vmem [thread:$0]  %s584_s1, 1024, %s31_s19, [#allocation7], %s527_s23, %s527_s23, %s528_s24  }
   0xe   :  { %s467_s27 = scalar_lea.vmem %s19_s21, 128  ;;  %p472_p6 = scmp.lt.s32.totalorder %s19_s21, %s19_s21 }
   0xf   :  { %p468_p5 = scmp.ne.s32.totalorder %s19_s21, %s467_s27  ;;  %p473_p7 = scmp.lt.s32.totalorder %s467_s27, %s467_s27 }
  0x11   :  { %p474_p8 = por %p473_p7, %p472_p6 }
  0x13   :  { %p475_p9 = pnand %p474_p8, %p468_p5 }
  0x15   :  { %478 = shalt.err (!%p475_p9)
}
  0x16   :  { %24 = dma.hbm_to_vmem [thread:$0]  %s583_s0, 128, %s19_s21, [#allocation4], %s527_s23, %s527_s23, %s528_s24  }
  0x17   :  { %s529_s30 = smov [#allocation8]  }
  0x18   :  { %s44_s6 = sshll.u32 %s529_s30, 4  ;;  %s45_s6 = int_to_ptr.vmem [resolvable:$true] %s44_s6 }
  0x19   :  { %s487_s7 = scalar_lea.vmem %s45_s6, 1024  ;;  %p492_p11 = scmp.lt.s32.totalorder %s45_s6, %s45_s6 }
  0x1a   :  { %p488_p10 = scmp.ne.s32.totalorder %s45_s6, %s487_s7  ;;  %p493_p12 = scmp.lt.s32.totalorder %s487_s7, %s487_s7 }
  0x1c   :  { %p494_p13 = por %p493_p12, %p492_p11 }
  0x1e   :  { %p495_p0 = pnand %p494_p13, %p488_p10 }
  0x20   :  { %498 = shalt.err (!%p495_p0)
}
  0x21   :  { %50 = dma.hbm_to_vmem [thread:$0]  %s586_s3, 1024, %s45_s6, [#allocation7], %s527_s23, %s527_s23, %s528_s24  }
  0x22   :  { %519 = dma.done.wait [#allocation4], 128  }
  0x23   :  { %520 = vsyncadd [#allocation4], 4294967168 }
  0x24   :  { %521 = dma.done.wait [#allocation7], 2048  }
  0x25   :  { %522 = vsyncadd [#allocation7], 4294965248  ;;  %v530_v0 = vmov 0.0   ;;  %vm531_vm0 = vmmov 0   ;;  %v422_v1 = vld [vmem:[#allocation6 + $0x38] sm:$0xff]   ;;  %v423_v2 = vld [vmem:[#allocation6 + $0x30] sm:$0xff]  }
  0x26   :  { %372 = vmatprep.subr.bf16.mxu0 %v530_v0  ;;  %388 = vmatprep.mubr.msk.bf16.mxu0 %vm531_vm0, %v530_v0  ;;  %v424_v3 = vld [vmem:[#allocation6 + $0x28] sm:$0xff]   ;;  %v431_v4 = vld [vmem:[#allocation8 + $0x38] sm:$0xff]   ;;  %v425_v5 = vld [vmem:[#allocation6 + $0x20] sm:$0xff]   ;;  %s532_s11 = smov [#allocation9]  }
  0x27   :  { %392 = vmatprep.subr.bf16.mxu1 %v530_v0  ;;  %408 = vmatprep.mubr.msk.bf16.mxu1 %vm531_vm0, %v530_v0  ;;  %v432_v6 = vld [vmem:[#allocation8 + $0x30] sm:$0xff]   ;;  %v426_v7 = vld [vmem:[#allocation6 + $0x18] sm:$0xff]   ;;  %v433_v8 = vld [vmem:[#allocation8 + $0x28] sm:$0xff]   ;;  %s322_s12 = sshll.u32 %s532_s11, 4  ;;  %s323_s12 = int_to_ptr.vmem [resolvable:$true] %s322_s12 }
  0x28   :  { %373 = vmatpush3.bf16.msra.mxu0 %v422_v1  ;;  %393 = vmatpush3.bf16.msra.mxu1 %v431_v4  ;;  %v427_v9 = vld [vmem:[#allocation6 + $0x10] sm:$0xff]   ;;  %v434_v10 = vld [vmem:[#allocation8 + $0x20] sm:$0xff]   ;;  %v428_v11 = vld [vmem:[#allocation6 + $0x8] sm:$0xff]   ;;  %p504_p2 = scmp.lt.s32.totalorder %s323_s12, %s323_s12 }
  0x29   :  { %374 = vmatprep.subr.bf16.mxu0 %v530_v0  ;;  %394 = vmatprep.subr.bf16.mxu1 %v530_v0  ;;  %v435_v12 = vld [vmem:[#allocation8 + $0x18] sm:$0xff]   ;;  %v429_v13 = vld [vmem:[#allocation6] sm:$0xff]   ;;  %v436_v15 = vld [vmem:[#allocation8 + $0x10] sm:$0xff]  }
  0x2a   :  { %v430_v14 = vld [vmem:[#allocation3] sm:$0xff]   ;;  %v437_v16 = vld [vmem:[#allocation8 + $0x8] sm:$0xff]   ;;  %v438_v17 = vld [vmem:[#allocation8] sm:$0xff]  }
  0x2b   :  { %v336_v18 = vld [vmem:[%s585_s2] ss:$0 sm:$0xff]  ;;  %s499_s2 = scalar_lea.vmem %s323_s12, 256 }
  0x2c   :  { %375 = vmatpush3.bf16.msra.mxu0 %v423_v2  ;;  %395 = vmatpush3.bf16.msra.mxu1 %v432_v6  ;;  %v335_v28 = vld [vmem:[%s587_s4] ss:$0 sm:$0xff]  ;;  %p500_p1 = scmp.ne.s32.totalorder %s323_s12, %s499_s2  ;;  %p505_p3 = scmp.lt.s32.totalorder %s499_s2, %s499_s2 }
  0x2d   :  { %376 = vmatprep.subr.bf16.mxu0 %v530_v0  ;;  %396 = vmatprep.subr.bf16.mxu1 %v530_v0 }
  0x2e   :  { %p506_p4 = por %p505_p3, %p504_p2 }
  0x30   :  { %377 = vmatpush3.bf16.msra.mxu0 %v424_v3  ;;  %397 = vmatpush3.bf16.msra.mxu1 %v433_v8  ;;  %p507_p5 = pnand %p506_p4, %p500_p1 }
  0x31   :  { %378 = vmatprep.subr.bf16.mxu0 %v530_v0  ;;  %398 = vmatprep.subr.bf16.mxu1 %v530_v0 }
  0x34   :  { %379 = vmatpush3.bf16.msra.mxu0 %v425_v5  ;;  %399 = vmatpush3.bf16.msra.mxu1 %v434_v10 }
  0x35   :  { %380 = vmatprep.subr.bf16.mxu0 %v530_v0  ;;  %400 = vmatprep.subr.bf16.mxu1 %v530_v0 }
  0x38   :  { %381 = vmatpush3.bf16.msra.mxu0 %v426_v7  ;;  %401 = vmatpush3.bf16.msra.mxu1 %v435_v12 }
  0x39   :  { %382 = vmatprep.subr.bf16.mxu0 %v530_v0  ;;  %402 = vmatprep.subr.bf16.mxu1 %v530_v0 }
  0x3c   :  { %383 = vmatpush3.bf16.msra.mxu0 %v427_v9  ;;  %403 = vmatpush3.bf16.msra.mxu1 %v436_v15 }
  0x3d   :  { %384 = vmatprep.subr.bf16.mxu0 %v530_v0  ;;  %404 = vmatprep.subr.bf16.mxu1 %v530_v0 }
  0x40   :  { %385 = vmatpush3.bf16.msra.mxu0 %v428_v11  ;;  %405 = vmatpush3.bf16.msra.mxu1 %v437_v16 }
  0x41   :  { %386 = vmatprep.subr.bf16.mxu0 %v530_v0  ;;  %406 = vmatprep.subr.bf16.mxu1 %v530_v0 }
  0x44   :  { %387 = vmatpush3.bf16.msra.mxu0 %v429_v13  ;;  %407 = vmatpush3.bf16.msra.mxu1 %v438_v17 }
  0x47   :  { %389 = vmatmul.mubr.bf16.vlgmr.msra.gmra.mxu0 %v430_v14 }
 0x107   :  { %v189_v19 = vpop.f32.mrf.mxu0 }
 0x108   :  { %v190_v21 = vadd.f32 %v336_v18, %v189_v19 }
 0x109   :  { %v390_v20 = vpop.f32.mrf.mxu0 }
 0x10a   :  { %v196_v25 = vmax.f32 %v190_v21, 0.0 }
 0x10b   :  { %v192_v22 = vpop.f32.mrf.mxu0 }
 0x10c   :  { %v193_v23 = vadd.f32 %v336_v18, %v192_v22 }
 0x10d   :  { %v391_v24 = vpop.f32.mrf.mxu0 }
 0x10e   :  { %v197_v26 = vmax.f32 %v193_v23, 0.0 }
 0x110   :  { %v200_v27 = vpack.c.bf16 %v197_v26, %v196_v25 }
 0x112   :  { %409 = vmatmul.mubr.bf16.vlgmr.msra.gmra.mxu1 %v200_v27 }
 0x1d2   :  { %v299_v29 = vpop.f32.mrf.mxu1 }
 0x1d3   :  { %v306_v30 = vadd.f32 %v335_v28, %v299_v29 }
 0x1d4   :  { %v410_v31 = vpop.f32.mrf.mxu1 }
 0x1d5   :  { %315 = vst [vmem:[#allocation9] sm:$0xff] %v306_v30 }
 0x1d6   :  { %v302_v32 = vpop.f32.mrf.mxu1 }
 0x1d7   :  { %v307_v33 = vadd.f32 %v335_v28, %v302_v32 }
 0x1d8   :  { %v411_v34 = vpop.f32.mrf.mxu1 }
 0x1d9   :  { %316 = vst [vmem:[#allocation9 + $0x8] sm:$0xff] %v307_v33 }
 0x1da   :  { %510 = shalt.err (!%p507_p5)
}
 0x1db   :  { %s533_s13 = smov 128   ;;  %s534_s4 = smov 8  }
 0x1dc   :  { %328 = dma.vmem_to_hbm [thread:$0]  %s323_s12, 256, %s588_s5, [#allocation5], %s533_s13, %s533_s13, %s534_s4  }
 0x1dd   :  { %523 = dma.done.wait [#allocation5], 256  }
 0x1de   :  { %524 = vsyncadd [#allocation5], 4294967040 }
 0x1df   :  { %332 = vsyncpa [#allocation4], 1 }
 0x1e0   :  { %333 = vsyncpa [#allocation7], 1 }
 0x1e1   :  { %334 = vsyncpa [#allocation5], 1 }

</bundles_post_ra>
